<compile_context>
chip_gen: v5e
topology: v5e:2x2
jax: 0.10.0
libtpu: 0.0.40
codegen_flags: <defaults>
</compile_context>

<pallas_src>
import jax
import jax.numpy as jnp
from jax.experimental import pallas as pl
from jax.experimental.pallas import tpu as pltpu

BETA = 100.0  # cfg.TRAIN.BETA


def _soft_argmax_kernel(x_ref, g_ref, out_ref):
    # x_ref : (Bt, J, N)   heatmap logits for Bt batch elements
    # g_ref : (Bt, 2, N)   lane-dense 2-D grid coordinates (x row, y row)
    # out_ref: (Bt, J, 3)  [x, y, entropy]
    x = x_ref[...].astype(jnp.float32) * BETA                # (Bt, J, N)
    m = jnp.max(x, axis=-1, keepdims=True)                   # (Bt, J, 1)
    xm = x - m
    e = jnp.exp(xm)                                          # single EUP pass
    denom = jnp.sum(e, axis=-1, keepdims=True)               # (Bt, J, 1)
    inv = 1.0 / denom                                        # exact, O(Bt*J)

    g = g_ref[...].astype(jnp.float32)                       # (Bt, 2, N)
    # coords as lane-dense weighted reductions (VPU mul + XLU reduce).
    cx = jnp.sum(e * g[:, 0:1, :], axis=-1, keepdims=True)   # (Bt, J, 1)
    cy = jnp.sum(e * g[:, 1:2, :], axis=-1, keepdims=True)   # (Bt, J, 1)
    # Analytic entropy: -sum(p*log p) = log(denom) - sum(e*(x-m))/denom.
    # (The reference's +1e-6 inside the log changes the result by O(1e-6),
    #  far below the validation tolerance.)
    ent_sum = jnp.sum(e * xm, axis=-1, keepdims=True)        # (Bt, J, 1)
    ent = jnp.log(denom) - ent_sum * inv                     # (Bt, J, 1)

    out = jnp.concatenate([cx * inv, cy * inv, ent], axis=-1)  # (Bt, J, 3)
    out_ref[...] = out.astype(out_ref.dtype)                 # one store


def soft_argmax_2d(cubes, grids, *, batch_block=None):
    """cubes: (B, J, N) f32, grids: (B, N, 2) f32 -> pred: (B, J, 3) f32."""
    B, J, N = cubes.shape
    assert grids.shape == (B, N, 2)

    # Lane-dense layout for the grid coordinates: (B, 2, N).
    grids_t = jnp.transpose(grids, (0, 2, 1))

    if batch_block is None:
        # Pack ~128 rows (Bt*J) per step, but keep >= 2 grid steps so both
        # TensorCores on v7x get work; ensure Bt divides B.
        cand = max(1, min(max(1, 128 // max(J, 1)), B // 2 if B >= 2 else 1))
        while B % cand:
            cand -= 1
        batch_block = cand
    Bt = batch_block
    assert B % Bt == 0
    grid = (B // Bt,)

    return pl.pallas_call(
        _soft_argmax_kernel,
        out_shape=jax.ShapeDtypeStruct((B, J, 3), jnp.float32),
        grid_spec=pltpu.PrefetchScalarGridSpec(
            num_scalar_prefetch=0,
            grid=grid,
            in_specs=[
                pl.BlockSpec((Bt, J, N), lambda b: (b, 0, 0)),
                pl.BlockSpec((Bt, 2, N), lambda b: (b, 0, 0)),
            ],
            out_specs=pl.BlockSpec((Bt, J, 3), lambda b: (b, 0, 0)),
        ),
        compiler_params=pltpu.CompilerParams(
            dimension_semantics=("parallel",)),
    )(cubes, grids_t)


def pose_regression_net_2d_forward(all_heatmaps, projectionM, grid_centers,
                                   cubes, grids):
    """Mirrors PoseRegressionNet_2D.forward.

    all_heatmaps / projectionM / grid_centers are accepted for signature parity.
    """
    # TODO(synk): ProjectLayer definition not provided — cubes/grids are passed
    #             in directly (constructed deterministically in __main__).
    # TODO(synk): V2VNet definition not provided — treated as identity here.
    valid_cubes = cubes
    pred = soft_argmax_2d(valid_cubes, grids)   # (B, J, 3) = cat([coords, entropy], -1)
    return pred


def _reference(cubes, grids):
    # Matches the PyTorch SoftArgmaxLayer (including the +1e-6 inside log).
    x = BETA * cubes                                           # (B, J, N)
    x = jax.nn.softmax(x, axis=-1)
    entropy = -jnp.sum(x * jnp.log(x + 1e-6), axis=-1, keepdims=True)   # (B, J, 1)
    coords = jnp.einsum("bjn,bnd->bjd", x, grids)              # (B, J, 2)
    return jnp.concatenate([coords, entropy], axis=-1)         # (B, J, 3)


if __name__ == "__main__":
    key = jax.random.PRNGKey(0)
    B, J = 2, 16                 # batch, num_joints
    H = W = 16                   # cube_size (2D)
    N = H * W                    # flattened spatial dim

    k1, k2, k3 = jax.random.split(key, 3)

    # Synthetic inputs matching the module's forward signature.
    all_heatmaps = [jax.random.normal(k1, (B, J, 64, 64), dtype=jnp.float32)]
    projectionM = jax.random.normal(k2, (B, 3, 4), dtype=jnp.float32)
    grid_centers = jnp.zeros((B, 3), dtype=jnp.float32)

    # Deterministic stand-ins for ProjectLayer outputs (definition not provided).
    cubes = jax.random.normal(k3, (B, J, N), dtype=jnp.float32)
    ys, xs = jnp.meshgrid(jnp.linspace(-1.0, 1.0, H),
                          jnp.linspace(-1.0, 1.0, W), indexing="ij")
    grid_2d = jnp.stack([xs.reshape(-1), ys.reshape(-1)], axis=-1)      # (N, 2)
    grids = jnp.broadcast_to(grid_2d[None], (B, N, 2)).astype(jnp.float32)

    pred = pose_regression_net_2d_forward(all_heatmaps, projectionM,
                                          grid_centers, cubes, grids)
    pred = jax.block_until_ready(pred)

    ref = _reference(cubes, grids)
    assert pred.shape == (B, J, 3)
    assert jnp.allclose(pred, ref, atol=1e-4, rtol=1e-4), (
        f"max err {jnp.max(jnp.abs(pred - ref))}")
    print("KERNEL_OK")
</pallas_src>

<mosaic_0001>
module attributes {stable_mosaic.version = 11 : i64} {
  func.func @_soft_argmax_kernel(%arg0: i32, %arg1: memref<1x16x256xf32, #tpu.memory_space<vmem>>, %arg2: memref<1x2x256xf32, #tpu.memory_space<vmem>>, %arg3: memref<1x16x3xf32, #tpu.memory_space<vmem>>) attributes {dimension_semantics = [#tpu.dimension_semantics<parallel>], iteration_bounds = array<i64: 2>, scalar_prefetch = 0 : i64, scratch_operands = 0 : i64, tpu.core_type = #tpu.core_type<tc>, window_params = [{transform_indices = @transform_0, window_bounds = array<i64: 1, 16, 256>}, {transform_indices = @transform_1, window_bounds = array<i64: 1, 2, 256>}, {transform_indices = @transform_2, window_bounds = array<i64: 1, 16, 3>}]} {
    %c0 = arith.constant 0 : index
    %c0_0 = arith.constant 0 : index
    %c0_1 = arith.constant 0 : index
    %0 = vector.load %arg1[%c0, %c0_0, %c0_1] : memref<1x16x256xf32, #tpu.memory_space<vmem>>, vector<1x16x256xf32>
    %cst = arith.constant 1.000000e+02 : f32
    %1 = vector.broadcast %cst : f32 to vector<1x16x256xf32>
    %2 = arith.mulf %0, %1 : vector<1x16x256xf32>
    %cst_2 = arith.constant dense<0xFF800000> : vector<1x16xf32>
    %3 = vector.multi_reduction <maximumf>, %2, %cst_2 [2] : vector<1x16x256xf32> to vector<1x16xf32>
    %4 = vector.shape_cast %3 : vector<1x16xf32> to vector<1x16x1xf32>
    %5 = vector.broadcast %4 : vector<1x16x1xf32> to vector<1x16x256xf32>
    %6 = arith.subf %2, %5 : vector<1x16x256xf32>
    %7 = math.exp %6 : vector<1x16x256xf32>
    %cst_3 = arith.constant dense<0.000000e+00> : vector<1x16xf32>
    %8 = vector.multi_reduction <add>, %7, %cst_3 [2] : vector<1x16x256xf32> to vector<1x16xf32>
    %9 = vector.shape_cast %8 : vector<1x16xf32> to vector<1x16x1xf32>
    %cst_4 = arith.constant 1.000000e+00 : f32
    %10 = vector.broadcast %cst_4 : f32 to vector<1x16x1xf32>
    %11 = arith.divf %10, %9 : vector<1x16x1xf32>
    %c0_5 = arith.constant 0 : index
    %c0_6 = arith.constant 0 : index
    %c0_7 = arith.constant 0 : index
    %12 = vector.load %arg2[%c0_5, %c0_6, %c0_7] : memref<1x2x256xf32, #tpu.memory_space<vmem>>, vector<1x2x256xf32>
    %13 = vector.extract_strided_slice %12 {offsets = [0, 0, 0], sizes = [1, 1, 256], strides = [1, 1, 1]} : vector<1x2x256xf32> to vector<1x1x256xf32>
    %14 = vector.broadcast %13 : vector<1x1x256xf32> to vector<1x16x256xf32>
    %15 = arith.mulf %7, %14 : vector<1x16x256xf32>
    %cst_8 = arith.constant dense<0.000000e+00> : vector<1x16xf32>
    %16 = vector.multi_reduction <add>, %15, %cst_8 [2] : vector<1x16x256xf32> to vector<1x16xf32>
    %17 = vector.shape_cast %16 : vector<1x16xf32> to vector<1x16x1xf32>
    %18 = vector.extract_strided_slice %12 {offsets = [0, 1, 0], sizes = [1, 1, 256], strides = [1, 1, 1]} : vector<1x2x256xf32> to vector<1x1x256xf32>
    %19 = vector.broadcast %18 : vector<1x1x256xf32> to vector<1x16x256xf32>
    %20 = arith.mulf %7, %19 : vector<1x16x256xf32>
    %cst_9 = arith.constant dense<0.000000e+00> : vector<1x16xf32>
    %21 = vector.multi_reduction <add>, %20, %cst_9 [2] : vector<1x16x256xf32> to vector<1x16xf32>
    %22 = vector.shape_cast %21 : vector<1x16xf32> to vector<1x16x1xf32>
    %23 = arith.mulf %7, %6 : vector<1x16x256xf32>
    %cst_10 = arith.constant dense<0.000000e+00> : vector<1x16xf32>
    %24 = vector.multi_reduction <add>, %23, %cst_10 [2] : vector<1x16x256xf32> to vector<1x16xf32>
    %25 = vector.shape_cast %24 : vector<1x16xf32> to vector<1x16x1xf32>
    %26 = math.log %9 : vector<1x16x1xf32>
    %27 = arith.mulf %25, %11 : vector<1x16x1xf32>
    %28 = arith.subf %26, %27 : vector<1x16x1xf32>
    %29 = arith.mulf %17, %11 : vector<1x16x1xf32>
    %30 = arith.mulf %22, %11 : vector<1x16x1xf32>
    %31 = tpu.concatenate %29, %30, %28 in 2 : vector<1x16x1xf32>, vector<1x16x1xf32>, vector<1x16x1xf32> -> vector<1x16x3xf32>
    %c0_11 = arith.constant 0 : index
    %c0_12 = arith.constant 0 : index
    %c0_13 = arith.constant 0 : index
    %32 = vector.load %arg3[%c0_11, %c0_12, %c0_13] : memref<1x16x3xf32, #tpu.memory_space<vmem>>, vector<1x16x3xf32>
    tpu.vector_store %arg3[%c0_11, %c0_12, %c0_13], %31 {strides = array<i32>} : memref<1x16x3xf32, #tpu.memory_space<vmem>>, vector<1x16x3xf32>,
    return
  }
  func.func @transform_0(%arg0: i32) -> (i32, i32, i32) {
    %c0_i32 = arith.constant 0 : i32
    %c0_i32_0 = arith.constant 0 : i32
    %c0_i32_1 = arith.constant 0 : i32
    return %arg0, %c0_i32, %c0_i32_0 : i32, i32, i32
  }
  func.func @transform_1(%arg0: i32) -> (i32, i32, i32) {
    %c0_i32 = arith.constant 0 : i32
    %c0_i32_0 = arith.constant 0 : i32
    %c0_i32_1 = arith.constant 0 : i32
    return %arg0, %c0_i32, %c0_i32_0 : i32, i32, i32
  }
  func.func @transform_2(%arg0: i32) -> (i32, i32, i32) {
    %c0_i32 = arith.constant 0 : i32
    %c0_i32_0 = arith.constant 0 : i32
    %c0_i32_1 = arith.constant 0 : i32
    return %arg0, %c0_i32, %c0_i32_0 : i32, i32, i32
  }
}

</mosaic_0001>

<bundles_post_ra>
// kernel: tpu_custom_call.1
= control target key start
LH: loop header
LB: loop body
LE: loop exit
PB: predicated region body
PF: predicated region fallthrough
CT: control target
= control target key end

     0   :  { %7 = vsyncpa [#allocation3], 0  ;;  %s756_s0 = inlined_call_operand.hbm [shape: f32[2,16,256], index: 0, kind: input, shape index: {}]   ;;  %s757_s1 = inlined_call_operand.hbm [shape: f32[2,2,256], index: 1, kind: input, shape index: {}]   ;;  %s758_s2 = inlined_call_operand.vmem [shape: f32[2,16,3], index: 2, kind: output, shape index: {}]  }
   0x1   :  { %9 = vsyncpa [#allocation3 + $0x1], 0 }
   0x2   :  { %10 = vsyncpa [#allocation5], 0 }
   0x3   :  { %12 = vsyncpa [#allocation5 + $0x1], 0  ;;  %s621_s9 = smov 0   ;;  %s623_s10 = smov 0  }
   0x4   :  { %s625_s11 = smov 0   ;;  %s627_s12 = smov 0  }
   0x5 LB: > { %s640_s13 = sadd.s32 4294967295, %s602_s12   ;;  %s643_s14 = sadd.s32 1, %s602_s12   ;;  %s602_s12 = sphi %s627_s12, %s766_s12   ;;  %s598_s11 = sphi %s625_s11, %s765_s11   ;;  %s594_s10 = sphi %s623_s10, %s764_s10   ;;  %s590_s9 = sphi %s621_s9, %s763_s9  }
   0x6   : > { %s22_s15 = ssub.s32 %s602_s12, %s643_s14  ;;  %s25_s16 = sadd.s32 1, %s598_s11 }
   0x7   : > { %p23_p0 = scmp.eq.s32.totalorder %s22_s15, 0  ;;  %p32_p1 = scmp.ne.s32.totalorder %s598_s11, %s594_s10 }
   0x8   : > { %p33_p2 = scmp.eq.s32.totalorder %s602_s12, 0  ;;  %p38_p3 = scmp.ne.s32.totalorder %s594_s10, %s590_s9 }
   0x9   : > { %s653_s17 = scalar_select %p23_p0, %s598_s11, %s25_s16  }
   0xa   : > { %p655_p4 = por %p33_p2, %p32_p1  ;;  %p39_p5 = scmp.eq.s32.totalorder %s640_s13, 0 }
   0xb   : > { %p453_p6 = scmp.lt.s32.totalorder %s602_s12, 2  ;;  %s666_s20 = sand.u32 1, %s598_s11  }
   0xc   : > { %p661_p7 = por %p39_p5, %p38_p3  ;;  %s426_s21 = sshll.u32 %s666_s20, 5 }
   0xd   : > { %s439_s22 = sshll.u32 %s602_s12, 5  ;;  %s118_s26 = scalar_lea.vmem [#allocation2], %s426_s21 }
   0xe   : > { %s123_s25 = scalar_lea.hbm %s756_s0, %s439_s22  ;;  %s126_s27 = sshll.u32 %s118_s26, 4  ;;  %s127_s27 = int_to_ptr.vmem [resolvable:$true] %s126_s27 }
   0xf   : > { %s124_s28 = sshll.u32 %s123_s25, 4  ;;  %p675_p8 = pnand %p453_p6, %p655_p4  ;;  %s125_s28 = int_to_ptr.hbm [resolvable:$true] %s124_s28 }
  0x10   : > { %p432_p9 = scmp.ge.s32.totalorder %s602_s12, 1  ;;  %s115_s30 = scalar_lea.sflag [#allocation3], %s666_s20 }
  0x11   : > { %s504_s3 = sshra.s32 %s125_s28, 4  ;;  %p508_p11 = pneg %p675_p8  ;;  %s505_s3 = int_to_ptr.hbm [resolvable:$true] %s504_s3 }
  0x12   : > { %s506_s4 = scalar_lea.hbm %s505_s3, 32  ;;  %s511_s7 = scalar_lea.hbm %s756_s0, 64 }
  0x13   : > { %p507_p10 = scmp.ne.s32.totalorder %s505_s3, %s506_s4  ;;  %p512_p0 = scmp.lt.s32.totalorder %s505_s3, %s756_s0 }
  0x14   : > { %p513_p1 = scmp.lt.s32.totalorder %s511_s7, %s506_s4 }
  0x15   : > { %p509_p12 = pnand %p508_p11, %p507_p10 }
  0x16   : > { %p514_p2 = por %p513_p1, %p512_p0 }
  0x17   : > { %p510_p13 = pneg %p509_p12 }
  0x19   : > { %p515_p3 = pnand %p514_p2, %p510_p13 }
  0x1b   : > { %518 = shalt.err (!%p515_p3)
}
  0x1c   : > { %s604_s15 = smov 256   ;;  %s605_s16 = smov 16  }
  0x1d   : > { %449 = dma.hbm_to_vmem [thread:$0]  (!%p675_p8), %s125_s28, 512, %s127_s27, %s115_s30, %s604_s15, %s604_s15, %s605_s16  }
  0x1e   : > { %p154_p4 = scmp.lt.s32.totalorder %s602_s12, 3  ;;  %s429_s18 = sshll.u32 %s666_s20, 2 }
  0x1f   : > { %s440_s21 = sshll.u32 %s602_s12, 2  ;;  %s140_s26 = scalar_lea.vmem [#allocation4], %s429_s18 }
  0x20   : > { %p699_p5 = pnand %p432_p9, %p154_p4  ;;  %s145_s25 = scalar_lea.hbm %s757_s1, %s440_s21 }
  0x21   : > { %s149_s3 = sshll.u32 %s140_s26, 4  ;;  %s147_s4 = sshll.u32 %s145_s25, 4  ;;  %s150_s3 = int_to_ptr.vmem [resolvable:$true] %s149_s3  ;;  %s148_s4 = int_to_ptr.hbm [resolvable:$true] %s147_s4 }
  0x22   : > { %s137_s5 = scalar_lea.sflag [#allocation5], %s666_s20  ;;  %s534_s27 = sshra.s32 %s148_s4, 4  ;;  %s535_s27 = int_to_ptr.hbm [resolvable:$true] %s534_s27 }
  0x23   : > { %s536_s28 = scalar_lea.hbm %s535_s27, 4  ;;  %s541_s6 = scalar_lea.hbm %s757_s1, 8 }
  0x24   : > { %p537_p6 = scmp.ne.s32.totalorder %s535_s27, %s536_s28  ;;  %p542_p12 = scmp.lt.s32.totalorder %s535_s27, %s757_s1 }
  0x25   : > { %p543_p13 = scmp.lt.s32.totalorder %s541_s6, %s536_s28 }
  0x26   : > { %p539_p9 = pnand %p537_p6, %p508_p11 }
  0x27   : > { %p544_p0 = por %p543_p13, %p542_p12 }
  0x28   : > { %p540_p10 = pneg %p539_p9 }
  0x2a   : > { %p545_p1 = pnand %p544_p0, %p540_p10 }
  0x2c   : > { %548 = shalt.err (!%p545_p1)
}
  0x2d   : > { %452 = dma.hbm_to_vmem [thread:$0]  (!%p675_p8), %s148_s4, 64, %s150_s3, %s137_s5  }
  0x2e   : > { %158 = sbr.rel (%p699_p5) target bundleno = 337 (0x151), region = 28  ;;  %s160_s20 = sand.u32 (!%p699_p5), 1, %s594_s10  }
  0x2f   : > { %s433_s9 = sshll.u32 (!%p699_p5), %s160_s20, 5  ;;  %s161_s15 = scalar_lea.sflag (!%p699_p5), [#allocation3], %s160_s20 }
  0x30   : > { %s164_s16 = scalar_lea.vmem (!%p699_p5), [#allocation2], %s433_s9 }
  0x33   : > { %581 = dma.done.wait (%p661_p7), %s161_s15, 512  }
  0x34   : > { %583 = vsyncadd (%p661_p7), %s161_s15, 4294966784  ;;  %s434_s18 = sshll.u32 %s160_s20, 2  ;;  %s171_s21 = scalar_lea.sflag [#allocation5], %s160_s20 }
  0x35   : > { %s174_s23 = scalar_lea.vmem [#allocation4], %s434_s18 }
  0x36   : > { %585 = dma.done.wait (%p661_p7), %s171_s21, 64  }
  0x37   : > { %587 = vsyncadd (%p661_p7), %s171_s21, 4294967232  ;;  %v206_v0 = vld [vmem:[%s164_s16] sm:$0xff]  ;;  %v207_v1 = vld [vmem:[%s164_s16 + $0x8] sm:$0xff]  ;;  %p201_p7 = scmp.lt.s32.totalorder %s640_s13, 1  ;;  %vm324_vm4 = vcmask 7168   ;;  %vm327_vm5 = vcmask 15360  }
  0x38   : > { %v210_v2 = vmul.f32 100.0, %v206_v0  ;;  %v211_v3 = vmul.f32 100.0, %v207_v1  ;;  %v208_v4 = vld [vmem:[%s164_s16 + $0x10] sm:$0xff]  ;;  %v209_v5 = vld [vmem:[%s164_s16 + $0x18] sm:$0xff]  ;;  %v268_v13 = vld [vmem:[%s174_s23] sm:$0xf] }
  0x39   : > { %v212_v7 = vmul.f32 100.0, %v208_v4  ;;  %v213_v8 = vmul.f32 100.0, %v209_v5  ;;  %v270_v16 = vperm.slane %v268_v13, 0  ;;  %v271_v17 = vperm.slane %v268_v13, 2  ;;  %s768_s13 = smov (!%p201_p7, %s640_s13), 1 }
  0x3a   : > { %v214_v6 = vmax.f32 %v210_v2, %v211_v3  ;;  %v286_v32 = vperm.slane %v268_v13, 1  ;;  %v287_v35 = vperm.slane %v268_v13, 3  ;;  %s441_s19 = sshll.u32 %s768_s13, 4  ;;  %vm330_vm6 = vcmask 23552  }
  0x3b   : > { %v217_v9 = vmax.f32 %v212_v7, %v213_v8  ;;  %v274_v19 = vperm.slane %v270_v16, 0  ;;  %v275_v22 = vperm.slane %v271_v17, 0  ;;  %s205_s24 = scalar_lea.vmem %s758_s2, %s441_s19 }
  0x3c   : > { %215 = vmax.xlane.f32.xlu0 %v214_v6  ;;  %v290_v36 = vperm.slane %v286_v32, 1  ;;  %v291_v38 = vperm.slane %v287_v35, 1 }
  0x44   : > { %218 = vmax.xlane.f32.xlu0 %v217_v9 }
  0xaf   : > { %v216_v10 = vpop.xlane.xlu0 %215 }
  0xb0   : > { %v220_v11 = vsub.f32 %v210_v2, %v216_v10  ;;  %v221_v12 = vsub.f32 %v211_v3, %v216_v10 }
  0xb2   : > { %v224_v14 = vmul.f32 1.442695, %v220_v11  ;;  %v226_v15 = vmul.f32 1.442695, %v221_v12 }
  0xb4   : > { %488 = vpow2.f32 %v224_v14 }
  0xb5   : > { %490 = vpow2.f32 %v226_v15 }
  0xb7   : > { %v219_v18 = vpop.xlane.xlu0 %218 }
  0xb8   : > { %v222_v20 = vsub.f32 %v212_v7, %v219_v18  ;;  %v223_v21 = vsub.f32 %v213_v8, %v219_v18 }
  0xba   : > { %v489_v23 = vpop.eup %488  ;;  %v228_v24 = vmul.f32 1.442695, %v222_v20  ;;  %v230_v25 = vmul.f32 1.442695, %v223_v21 }
  0xbb   : > { %v491_v26 = vpop.eup %490  ;;  %v302_v27 = vmul.f32 %v489_v23, %v220_v11  ;;  %v276_v28 = vmul.f32 %v489_v23, %v274_v19  ;;  %v292_v49 = vmul.f32 %v489_v23, %v290_v36 }
  0xbc   : > { %492 = vpow2.f32 %v228_v24  ;;  %v232_v29 = vadd.f32 %v491_v26, %v489_v23  ;;  %v303_v30 = vmul.f32 %v491_v26, %v221_v12  ;;  %v277_v31 = vmul.f32 %v491_v26, %v275_v22 }
  0xbd   : > { %494 = vpow2.f32 %v230_v25  ;;  %v293_v50 = vmul.f32 %v491_v26, %v291_v38 }
  0xbe   : > { %233 = vadd.xlane.f32.xlu1 %v232_v29  ;;  %v306_v33 = vadd.f32 %v303_v30, %v302_v27  ;;  %v280_v34 = vadd.f32 %v277_v31, %v276_v28 }
  0xbf   : > { %v296_v52 = vadd.f32 %v293_v50, %v292_v49 }
  0xc0   : > { %307 = vadd.xlane.f32.xlu2 %v306_v33  ;;  %281 = vadd.xlane.f32.xlu0 %v280_v34 }
  0xc2   : > { %v493_v37 = vpop.eup %492 }
  0xc3   : > { %v495_v39 = vpop.eup %494  ;;  %v304_v40 = vmul.f32 %v493_v37, %v222_v20  ;;  %v294_v41 = vmul.f32 %v493_v37, %v290_v36  ;;  %v278_v47 = vmul.f32 %v493_v37, %v274_v19 }
  0xc4   : > { %v235_v42 = vadd.f32 %v495_v39, %v493_v37  ;;  %v305_v43 = vmul.f32 %v495_v39, %v223_v21  ;;  %v295_v44 = vmul.f32 %v495_v39, %v291_v38  ;;  %v279_v48 = vmul.f32 %v495_v39, %v275_v22 }
  0xc6   : > { %236 = vadd.xlane.f32.xlu1 %v235_v42  ;;  %v309_v45 = vadd.f32 %v305_v43, %v304_v40  ;;  %v299_v46 = vadd.f32 %v295_v44, %v294_v41  ;;  %v283_v51 = vadd.f32 %v279_v48, %v278_v47 }
  0xc8   : > { %310 = vadd.xlane.f32.xlu2 %v309_v45  ;;  %300 = vadd.xlane.f32.xlu0 %v299_v46 }
  0xce   : > { %284 = vadd.xlane.f32.xlu1 %v283_v51 }
  0xd0   : > { %297 = vadd.xlane.f32.xlu2 %v296_v52 }
 0x131   : > { %v234_v53 = vpop.xlane.xlu1 %233 }
 0x132   : > { %496 = vrcp.f32 %v234_v53  ;;  %v249_v60 = vand.u32 2147483648, %v234_v53  ;;  %v247_v62 = vand.u32 2147483647, %v234_v53  ;;  %vm243_vm1 = vweird.f32 %v234_v53 }
 0x133   : > { %v308_v54 = vpop.xlane.xlu2 %307  ;;  %498 = vlog2.f32 %v234_v53  ;;  %v282_v3 = vpop.xlane.xlu0 %281 }
 0x134   : > { %v250_v2 = vor.u32 1.1754944e-38, %v249_v60  ;;  %vm248_vm3 = vcmp.eq.f32.partialorder %v247_v62, 8.507059e+37 }
 0x138   : > { %v497_v55 = vpop.eup %496 }
 0x139   : > { %v239_v56 = vmul.f32 %v497_v55, %v234_v53  ;;  %v237_v57 = vpop.xlane.xlu1 %236  ;;  %vm244_vm0 = vweird.f32 %v497_v55  ;;  %v499_v63 = vpop.eup %498 }
 0x13a   : > { %500 = vrcp.f32 %v237_v57  ;;  %vm245_vm2 = vmor %vm243_vm1, %vm244_vm0  ;;  %v313_v7 = vmul.f32 0.6931472, %v499_v63  ;;  %v264_v12 = vand.u32 2147483648, %v237_v57  ;;  %v262_v16 = vand.u32 2147483647, %v237_v57 }
 0x13b   : > { %v240_v58 = vsub.f32 1.0, %v239_v56  ;;  %v311_v59 = vpop.xlane.xlu2 %310  ;;  %502 = vlog2.f32 %v237_v57  ;;  %vm258_vm8 = vweird.f32 %v237_v57  ;;  %v301_v24 = vpop.xlane.xlu0 %300 }
 0x13c   : > { %v265_v21 = vor.u32 1.1754944e-38, %v264_v12  ;;  %vm263_vm10 = vcmp.eq.f32.partialorder %v262_v16, 8.507059e+37 }
 0x13d   : > { %v241_v61 = vmul.f32 %v497_v55, %v240_v58 }
 0x13f   : > { %v242_v0 = vadd.f32 %v497_v55, %v241_v61 }
 0x140   : > { %v501_v1 = vpop.eup %500 }
 0x141   : > { %v246_v4 = vsel %vm245_vm2, %v497_v55, %v242_v0  ;;  %v254_v5 = vmul.f32 %v501_v1, %v237_v57  ;;  %vm259_vm7 = vweird.f32 %v501_v1  ;;  %v503_v20 = vpop.eup %502  ;;  %v285_v25 = vpop.xlane.xlu1 %284 }
 0x142   : > { %v251_v6 = vsel %vm248_vm3, %v250_v2, %v246_v4  ;;  %vm260_vm9 = vmor %vm258_vm8, %vm259_vm7  ;;  %v315_v26 = vmul.f32 0.6931472, %v503_v20 }
 0x143   : > { %v316_v8 = vmul.f32 %v308_v54, %v251_v6  ;;  %v320_v9 = vmul.f32 %v282_v3, %v251_v6  ;;  %v255_v10 = vsub.f32 1.0, %v254_v5  ;;  %v298_v11 = vpop.xlane.xlu2 %297 }
 0x144   : > { %v322_v13 = vmul.f32 %v298_v11, %v251_v6 }
 0x145   : > { %v318_v14 = vsub.f32 %v313_v7, %v316_v8  ;;  %v256_v15 = vmul.f32 %v501_v1, %v255_v10 }
 0x146   : > { %v325_v17 = vsel %vm324_vm4, %v320_v9, %v322_v13 }
 0x147   : > { %v257_v18 = vadd.f32 %v501_v1, %v256_v15  ;;  %v328_v19 = vsel %vm327_vm5, %v325_v17, %v318_v14 }
 0x148   : > { %331 = vst.msk [vmem:[%s205_s24] sm:$0xff] %vm330_vm6, %v328_v19 }
 0x149   : > { %v261_v22 = vsel %vm260_vm9, %v501_v1, %v257_v18 }
 0x14a   : > { %v266_v23 = vsel %vm263_vm10, %v265_v21, %v261_v22 }
 0x14b   : > { %v317_v27 = vmul.f32 %v311_v59, %v266_v23  ;;  %v323_v28 = vmul.f32 %v301_v24, %v266_v23  ;;  %v321_v29 = vmul.f32 %v285_v25, %v266_v23 }
 0x14d   : > { %v319_v30 = vsub.f32 %v315_v26, %v317_v27  ;;  %v326_v31 = vsel %vm324_vm4, %v321_v29, %v323_v28 }
 0x14f   : > { %v329_v32 = vsel %vm327_vm5, %v326_v31, %v319_v30 }
 0x150   : > { %332 = vst.msk [vmem:[%s205_s24 + $0x8] sm:$0xff] %vm330_vm6, %v329_v32 }
 0x151 PF: > { %p15_p8 = scmp.ge.s32.totalorder %s643_s14, 4   ;;  %s763_s9 = smov %s594_s10 }
 0x152   : > { %s764_s10 = smov %s598_s11  ;;  %s765_s11 = smov %s653_s17 }
 0x153   : > { %s766_s12 = smov %s643_s14  ;;  %17 = sbr.rel (!%p15_p8) target bundleno = 5 (0x5), region = 81 }
 0x158   :  { %354 = vsyncpa [#allocation3], 1 }
 0x159   :  { %356 = vsyncpa [#allocation3 + $0x1], 1 }
 0x15a   :  { %357 = vsyncpa [#allocation5], 1 }
 0x15b   :  { %359 = vsyncpa [#allocation5 + $0x1], 1 }

</bundles_post_ra>
